<compile_context>
chip_gen: v7x
topology: tpu7x:2x2x1
jax: 0.10.0
libtpu: 0.0.40
codegen_flags: <defaults>
</compile_context>

<pallas_src>
import math

import jax
import jax.numpy as jnp
from jax.experimental import pallas as pl
from jax.experimental.pallas import tpu as pltpu

_LANE = 128
_SUBLANE = 8


# --------------------------------------------------------------------------
# Kernels
# --------------------------------------------------------------------------
def _degree_kernel(adj_ref, inv_deg_ref, acc_ref):
    """inv_deg[i] = 1 / sum_j adj[i, j]   (0 where the row degree is 0)."""
    k = pl.program_id(1)

    @pl.when(k == 0)
    def _init():
        acc_ref[...] = jnp.zeros_like(acc_ref)

    acc_ref[...] += jnp.sum(adj_ref[...], axis=1, keepdims=True)

    @pl.when(k == pl.num_programs(1) - 1)
    def _finalize():
        deg = acc_ref[...]
        safe = jnp.where(deg > 0.0, deg, 1.0)
        inv_deg_ref[...] = jnp.where(deg > 0.0, 1.0 / safe, 0.0)


def _gcn_layer1_kernel(adj_ref, invd_row_ref, invd_col_ref, x_ref,
                       w1_ref, b1_ref, w2_ref, out_ref, acc_ref):
    """out = inv_d_row * (relu((inv_d_row * (adj @ (inv_d_col * X))) @ W1 + b1) @ W2).

    i.e. the layer-1 hidden features H already multiplied by W2 and pre-scaled
    by the row-side inverse degree, so layer 2 reduces to relu(adj @ out + b2)
    scaled by its own row-side inverse degree.
    """
    k = pl.program_id(1)

    @pl.when(k == 0)
    def _init():
        acc_ref[...] = jnp.zeros_like(acc_ref)

    x_scaled = x_ref[...] * invd_col_ref[...]                  # (tk, Fin)
    acc_ref[...] += jnp.dot(adj_ref[...], x_scaled,
                            preferred_element_type=jnp.float32)

    @pl.when(k == pl.num_programs(1) - 1)
    def _finalize():
        invd = invd_row_ref[...]                               # (tm, 1)
        agg = acc_ref[...] * invd                              # (A_norm @ X) rows
        h = jnp.dot(agg, w1_ref[...], preferred_element_type=jnp.float32)
        h = jnp.maximum(h + b1_ref[...], 0.0)                  # hidden features
        out_ref[...] = invd * jnp.dot(h, w2_ref[...],
                                      preferred_element_type=jnp.float32)


def _gcn_layer2_kernel(adj_ref, invd_row_ref, m_ref, b2_ref, out_ref, acc_ref):
    """out = relu(inv_d_row * (adj @ m) + b2)   with m = inv_d * (H @ W2)."""
    k = pl.program_id(1)

    @pl.when(k == 0)
    def _init():
        acc_ref[...] = jnp.zeros_like(acc_ref)

    acc_ref[...] += jnp.dot(adj_ref[...], m_ref[...],
                            preferred_element_type=jnp.float32)

    @pl.when(k == pl.num_programs(1) - 1)
    def _finalize():
        z = acc_ref[...] * invd_row_ref[...] + b2_ref[...]
        out_ref[...] = jnp.maximum(z, 0.0)


# --------------------------------------------------------------------------
# Wrapper
# --------------------------------------------------------------------------
def _round_up(x, m):
    return ((x + m - 1) // m) * m


def _pad2d(a, rows, cols):
    r, c = a.shape
    if r == rows and c == cols:
        return a
    return jnp.pad(a, ((0, rows - r), (0, cols - c)))


def gcn_forward(x, adj, w1, b1, w2, b2):
    """2-layer GCN forward matching the PyTorch module's semantics."""
    n, f_in = x.shape
    hid = w1.shape[1]
    f_out = w2.shape[1]
    b1 = jnp.asarray(b1, jnp.float32).reshape(1, -1)
    b2 = jnp.asarray(b2, jnp.float32).reshape(1, -1)

    # ---- padding: feature dims to lane width, node dim to the tile size ----
    f_in_p = _round_up(f_in, _LANE)
    hid_p = _round_up(hid, _LANE)
    f_out_p = _round_up(f_out, _LANE)

    if n <= 512:
        n_pad = _round_up(n, _SUBLANE)
        tm = tk = n_pad
    else:
        # 256x512 f32 adj tile = 512 KiB per buffer: fits v7x's 64 MiB physical
        # (32 MiB scoped) VMEM with double buffering and plenty of headroom.
        tm, tk = 256, 512
        n_pad = _round_up(n, tk)

    x_p = _pad2d(jnp.asarray(x, jnp.float32), n_pad, f_in_p)
    adj_p = _pad2d(jnp.asarray(adj, jnp.float32), n_pad, n_pad)
    w1_p = _pad2d(jnp.asarray(w1, jnp.float32), f_in_p, hid_p)
    b1_p = _pad2d(b1, 1, hid_p)
    w2_p = _pad2d(jnp.asarray(w2, jnp.float32), hid_p, f_out_p)
    b2_p = _pad2d(b2, 1, f_out_p)

    grid = (n_pad // tm, n_pad // tk)
    params = pltpu.CompilerParams(
        dimension_semantics=("parallel", "arbitrary"),
        vmem_limit_bytes=32 * 1024 * 1024,
    )

    # ---- pass 0: row degrees -> inverse degree vector (N, 1) ---------------
    inv_deg = pl.pallas_call(
        _degree_kernel,
        out_shape=jax.ShapeDtypeStruct((n_pad, 1), jnp.float32),
        grid=grid,
        in_specs=[pl.BlockSpec((tm, tk), lambda i, k: (i, k))],
        out_specs=pl.BlockSpec((tm, 1), lambda i, k: (i, 0)),
        scratch_shapes=[pltpu.VMEM((tm, 1), jnp.float32)],
        compiler_params=params,
        cost_estimate=pl.CostEstimate(
            flops=n_pad * n_pad,
            transcendentals=0,
            bytes_accessed=4 * (n_pad * n_pad + n_pad)),
    )(adj_p)

    # ---- pass 1: m = inv_d * (relu(A_norm @ X @ W1 + b1) @ W2) -------------
    layer1_flops = (2 * n_pad * n_pad * f_in_p
                    + 2 * n_pad * f_in_p * hid_p
                    + 2 * n_pad * hid_p * f_out_p)
    layer1_bytes = 4 * (n_pad * n_pad
                        + grid[0] * n_pad * f_in_p
                        + n_pad * f_out_p
                        + f_in_p * hid_p + hid_p * f_out_p)
    m = pl.pallas_call(
        _gcn_layer1_kernel,
        out_shape=jax.ShapeDtypeStruct((n_pad, f_out_p), jnp.float32),
        grid=grid,
        in_specs=[
            pl.BlockSpec((tm, tk), lambda i, k: (i, k)),          # adj tile
            pl.BlockSpec((tm, 1), lambda i, k: (i, 0)),           # inv_deg rows
            pl.BlockSpec((tk, 1), lambda i, k: (k, 0)),           # inv_deg cols
            pl.BlockSpec((tk, f_in_p), lambda i, k: (k, 0)),      # X row block
            pl.BlockSpec((f_in_p, hid_p), lambda i, k: (0, 0)),   # W1
            pl.BlockSpec((1, hid_p), lambda i, k: (0, 0)),        # b1
            pl.BlockSpec((hid_p, f_out_p), lambda i, k: (0, 0)),  # W2
        ],
        out_specs=pl.BlockSpec((tm, f_out_p), lambda i, k: (i, 0)),
        scratch_shapes=[pltpu.VMEM((tm, f_in_p), jnp.float32)],
        compiler_params=params,
        cost_estimate=pl.CostEstimate(
            flops=layer1_flops, transcendentals=0, bytes_accessed=layer1_bytes),
    )(adj_p, inv_deg, inv_deg, x_p, w1_p, b1_p, w2_p)

    # ---- pass 2: Y = relu(inv_d * (adj @ m) + b2) ---------------------------
    layer2_flops = 2 * n_pad * n_pad * f_out_p
    layer2_bytes = 4 * (n_pad * n_pad
                        + grid[0] * n_pad * f_out_p
                        + n_pad * f_out_p)
    y = pl.pallas_call(
        _gcn_layer2_kernel,
        out_shape=jax.ShapeDtypeStruct((n_pad, f_out_p), jnp.float32),
        grid=grid,
        in_specs=[
            pl.BlockSpec((tm, tk), lambda i, k: (i, k)),          # adj tile
            pl.BlockSpec((tm, 1), lambda i, k: (i, 0)),           # inv_deg rows
            pl.BlockSpec((tk, f_out_p), lambda i, k: (k, 0)),     # m row block
            pl.BlockSpec((1, f_out_p), lambda i, k: (0, 0)),      # b2
        ],
        out_specs=pl.BlockSpec((tm, f_out_p), lambda i, k: (i, 0)),
        scratch_shapes=[pltpu.VMEM((tm, f_out_p), jnp.float32)],
        compiler_params=params,
        cost_estimate=pl.CostEstimate(
            flops=layer2_flops, transcendentals=0, bytes_accessed=layer2_bytes),
    )(adj_p, inv_deg, m, b2_p)

    return y[:n, :f_out]


# --------------------------------------------------------------------------
# Parameter init (intended semantics of the PyTorch xinitialization) & reference
# --------------------------------------------------------------------------
def x_init_std(mean_A, var_A, var_F, num_of_nodes, d):
    stds = [
        math.sqrt(2.0 * i / (d * num_of_nodes * var_A * i + d * mean_A ** 2))
        for i in var_F
    ]
    return sum(stds) / len(stds)


def make_params(key, input_dim, hidden_dim, output_dim,
                mean_A, var_A, var_F, num_of_nodes):
    k1, k2 = jax.random.split(key)
    std1 = x_init_std(mean_A, var_A, var_F, num_of_nodes, input_dim)
    std2 = x_init_std(mean_A, var_A, var_F, num_of_nodes, hidden_dim)
    w1 = std1 * jax.random.normal(k1, (input_dim, hidden_dim), jnp.float32)
    b1 = jnp.zeros((1, hidden_dim), jnp.float32)
    w2 = std2 * jax.random.normal(k2, (hidden_dim, output_dim), jnp.float32)
    b2 = jnp.zeros((1, output_dim), jnp.float32)
    return w1, b1, w2, b2


def gcn_reference(x, adj, w1, b1, w2, b2):
    deg = jnp.sum(adj, axis=1)
    a_norm = adj / (deg[:, None] * deg[None, :])
    h = jnp.maximum(a_norm @ x @ w1 + b1, 0.0)
    return jnp.maximum(a_norm @ h @ w2 + b2, 0.0)


if __name__ == "__main__":
    # Small, module-consistent shapes.
    num_of_nodes = 8
    input_dim, hidden_dim, output_dim = 16, 32, 8
    mean_A, var_A, var_F = 0.5, 0.25, [1.0, 2.0, 4.0]

    key = jax.random.PRNGKey(0)
    kx, ka, kp = jax.random.split(key, 3)

    # Node features (N, F_in).
    x = jax.random.normal(kx, (num_of_nodes, input_dim), jnp.float32)

    # Dense adjacency with self-loops so every degree > 0 (invertible diag(D)).
    adj = (jax.random.uniform(ka, (num_of_nodes, num_of_nodes)) > 0.5)
    adj = adj.astype(jnp.float32)
    adj = jnp.clip(adj + jnp.eye(num_of_nodes, dtype=jnp.float32), 0.0, 1.0)

    w1, b1, w2, b2 = make_params(kp, input_dim, hidden_dim, output_dim,
                                 mean_A, var_A, var_F, num_of_nodes)

    out = jax.block_until_ready(gcn_forward(x, adj, w1, b1, w2, b2))

    ref = gcn_reference(x, adj, w1, b1, w2, b2)
    assert out.shape == (num_of_nodes, output_dim)
    err = float(jnp.max(jnp.abs(out - ref)))
    assert jnp.allclose(out, ref, atol=2e-5, rtol=1e-4), f"max abs err {err}"

    print("KERNEL_OK")
</pallas_src>

<mosaic_0001>
module attributes {stable_mosaic.version = 11 : i64} {
  func.func @_degree_kernel(%arg0: i32, %arg1: i32, %arg2: memref<8x8xf32, #tpu.memory_space<vmem>>, %arg3: memref<8x1xf32, #tpu.memory_space<vmem>>, %arg4: memref<8x1xf32, #tpu.memory_space<vmem>>) attributes {dimension_semantics = [#tpu.dimension_semantics<parallel>, #tpu.dimension_semantics<arbitrary>], iteration_bounds = array<i64: 1, 1>, scalar_prefetch = 0 : i64, scratch_operands = 1 : i64, tpu.core_type = #tpu.core_type<tc>, window_params = [{transform_indices = @transform_0, window_bounds = array<i64: 8, 8>}, {transform_indices = @transform_1, window_bounds = array<i64: 8, 1>}]} {
    %c0_i32 = arith.constant 0 : i32
    %0 = arith.cmpi eq, %arg1, %c0_i32 : i32
    %1 = arith.extui %0 : i1 to i32
    %c0_i32_0 = arith.constant 0 : i32
    %2 = arith.cmpi ne, %1, %c0_i32_0 : i32
    scf.if %2 {
      %cst_8 = arith.constant 0.000000e+00 : f32
      %12 = vector.broadcast %cst_8 : f32 to vector<8x1xf32>
      %c0_9 = arith.constant 0 : index
      %c0_10 = arith.constant 0 : index
      %13 = vector.load %arg4[%c0_9, %c0_10] : memref<8x1xf32, #tpu.memory_space<vmem>>, vector<8x1xf32>
      tpu.vector_store %arg4[%c0_9, %c0_10], %12 {strides = array<i32>} : memref<8x1xf32, #tpu.memory_space<vmem>>, vector<8x1xf32>,
    } else {
    }
    %c0 = arith.constant 0 : index
    %c0_1 = arith.constant 0 : index
    %3 = vector.load %arg4[%c0, %c0_1] : memref<8x1xf32, #tpu.memory_space<vmem>>, vector<8x1xf32>
    %c0_2 = arith.constant 0 : index
    %c0_3 = arith.constant 0 : index
    %4 = vector.load %arg2[%c0_2, %c0_3] : memref<8x8xf32, #tpu.memory_space<vmem>>, vector<8x8xf32>
    %cst = arith.constant dense<0.000000e+00> : vector<8xf32>
    %5 = vector.multi_reduction <add>, %4, %cst [1] : vector<8x8xf32> to vector<8xf32>
    %6 = vector.shape_cast %5 : vector<8xf32> to vector<8x1xf32>
    %7 = arith.addf %3, %6 : vector<8x1xf32>
    %c0_4 = arith.constant 0 : index
    %c0_5 = arith.constant 0 : index
    %8 = vector.load %arg4[%c0_4, %c0_5] : memref<8x1xf32, #tpu.memory_space<vmem>>, vector<8x1xf32>
    tpu.vector_store %arg4[%c0_4, %c0_5], %7 {strides = array<i32>} : memref<8x1xf32, #tpu.memory_space<vmem>>, vector<8x1xf32>,
    %c0_i32_6 = arith.constant 0 : i32
    %9 = arith.cmpi eq, %arg1, %c0_i32_6 : i32
    %10 = arith.extui %9 : i1 to i32
    %c0_i32_7 = arith.constant 0 : i32
    %11 = arith.cmpi ne, %10, %c0_i32_7 : i32
    scf.if %11 {
      %c0_8 = arith.constant 0 : index
      %c0_9 = arith.constant 0 : index
      %12 = vector.load %arg4[%c0_8, %c0_9] : memref<8x1xf32, #tpu.memory_space<vmem>>, vector<8x1xf32>
      %cst_10 = arith.constant 0.000000e+00 : f32
      %13 = vector.broadcast %cst_10 : f32 to vector<8x1xf32>
      %14 = arith.cmpf ogt, %12, %13 : vector<8x1xf32>
      %cst_11 = arith.constant 1.000000e+00 : f32
      %15 = vector.broadcast %cst_11 : f32 to vector<8x1xf32>
      %16 = arith.select %14, %12, %15 : vector<8x1xi1>, vector<8x1xf32>
      %cst_12 = arith.constant 0.000000e+00 : f32
      %17 = vector.broadcast %cst_12 : f32 to vector<8x1xf32>
      %18 = arith.cmpf ogt, %12, %17 : vector<8x1xf32>
      %cst_13 = arith.constant 1.000000e+00 : f32
      %19 = vector.broadcast %cst_13 : f32 to vector<8x1xf32>
      %20 = arith.divf %19, %16 : vector<8x1xf32>
      %cst_14 = arith.constant 0.000000e+00 : f32
      %21 = vector.broadcast %cst_14 : f32 to vector<8x1xf32>
      %22 = arith.select %18, %20, %21 : vector<8x1xi1>, vector<8x1xf32>
      %c0_15 = arith.constant 0 : index
      %c0_16 = arith.constant 0 : index
      %23 = vector.load %arg3[%c0_15, %c0_16] : memref<8x1xf32, #tpu.memory_space<vmem>>, vector<8x1xf32>
      tpu.vector_store %arg3[%c0_15, %c0_16], %22 {strides = array<i32>} : memref<8x1xf32, #tpu.memory_space<vmem>>, vector<8x1xf32>,
    } else {
    }
    return
  }
  func.func @transform_0(%arg0: i32, %arg1: i32) -> (i32, i32) {
    %c0_i32 = arith.constant 0 : i32
    return %arg0, %arg1 : i32, i32
  }
  func.func @transform_1(%arg0: i32, %arg1: i32) -> (i32, i32) {
    %c0_i32 = arith.constant 0 : i32
    %c0_i32_0 = arith.constant 0 : i32
    return %arg0, %c0_i32 : i32, i32
  }
}

</mosaic_0001>

<bundles_post_ra>
// kernel: tpu_custom_call.1
= control target key start
LH: loop header
LB: loop body
LE: loop exit
PB: predicated region body
PF: predicated region fallthrough
CT: control target
= control target key end

     0   :  { %6 = vsyncpa [#allocation4], 0  ;;  %s78_s6 = smov [#allocation3]   ;;  %s108_s0 = inlined_call_operand.hbm [shape: f32[8,8], index: 0, kind: input, shape index: {}]   ;;  %s109_s1 = inlined_call_operand.vmem [shape: f32[8,1], index: 1, kind: output, shape index: {}]  }
   0x1   :  { %s13_s7 = sshll.u32 %s78_s6, 4  ;;  %s54_s10 = scalar_lea.hbm %s108_s0, 128  ;;  %s14_s7 = int_to_ptr.vmem [resolvable:$true] %s13_s7 }
   0x2   :  { %p55_p0 = scmp.ne.s32.totalorder %s108_s0, %s54_s10  ;;  %p58_p1 = scmp.lt.u32.totalorder %s54_s10, %s108_s0 }
   0x4   :  { %p60_p2 = pnand %p58_p1, %p55_p0 }
   0x6   :  { %63 = shalt.err (!%p60_p2)
}
   0x7   :  { %s64_s15 = scalar_lea.vmem %s14_s7, 128  ;;  %p69_p4 = scmp.lt.s32.totalorder %s14_s7, %s14_s7 }
   0x8   :  { %p65_p3 = scmp.ne.s32.totalorder %s14_s7, %s64_s15  ;;  %p70_p5 = scmp.lt.s32.totalorder %s64_s15, %s64_s15 }
   0xa   :  { %p71_p6 = por %p70_p5, %p69_p4 }
   0xc   :  { %p72_p7 = pnand %p71_p6, %p65_p3 }
   0xe   :  { %75 = shalt.err (!%p72_p7)
}
   0xf   :  { %16 = dma.hbm_to_vmem [thread:$0]  %s108_s0, 128, %s14_s7, [#allocation4]  }
  0x10   :  { %76 = dma.done.wait [#allocation4], 128  }
  0x11   :  { %77 = vsyncadd [#allocation4], 4294967168  ;;  %vm24_vm0 = vcmask 7168   ;;  %v79_v0 = vmov 0.0   ;;  %vm28_vm1 = vcmask 64512   ;;  %v27_v1 = vld [vmem:[#allocation3] sm:$0xff] }
  0x12   :  { %25 = vst.msk [vmem:[#allocation2] sm:$0xff] %vm24_vm0, %v79_v0  ;;  %v29_v2 = vsel %vm28_vm1, %v27_v1, 0.0 }
  0x13   :  { %30 = vadd.xlane.f32.xlu0 %v29_v2 }
  0x19   :  { %v26_v3 = vld [vmem:[#allocation2] sm:$0xff] }
  0xa0   :  { %v31_v4 = vpop.xlane.xlu0 %30 }
  0xa1   :  { %v32_v5 = vadd.f32 %v31_v4, %v26_v3 }
  0xa3   :  { %34 = vst.msk [vmem:[#allocation2] sm:$0xff] %vm24_vm0, %v32_v5 }
  0xaa   :  { %v38_v6 = vld [vmem:[#allocation2] sm:$0xff] }
  0xab   :  { %vm39_vm2 = vcmp.gt.f32.partialorder %v38_v6, 0.0 }
  0xac   :  { %v40_v7 = vsel %vm39_vm2, %v38_v6, 1.0 }
  0xad   :  { %52 = vrcp.f32 %v40_v7 }
  0xb7   :  { %v53_v8 = vpop.eup %52 }
  0xb8   :  { %v43_v9 = vsel %vm39_vm2, %v53_v8, 0.0 }
  0xb9   :  { %44 = vst.msk [vmem:[%s109_s1] sm:$0xff] %vm24_vm0, %v43_v9 }
  0xba   :  { %49 = vsyncpa [#allocation4], 1 }

</bundles_post_ra>
